<compile_context>
chip_gen: v6e
topology: v6e:2x2x1
jax: 0.10.0
libtpu: 0.0.40
codegen_flags: <defaults>
</compile_context>

<pallas_src>
import jax
import jax.numpy as jnp
from jax.experimental import pallas as pl
from jax.experimental.pallas import tpu as pltpu


def _round_up(n, m):
    return ((n + m - 1) // m) * m


def pgn_kernel(x_ref, w1_ref, b1_ref, w2_ref, b2_ref, out_ref):
    # Hidden layer: (TB, D) @ (D, H) + (1, H) -> ReLU
    h = jnp.dot(
        x_ref[...], w1_ref[...],
        preferred_element_type=jnp.float32,
        precision=jax.lax.Precision.HIGHEST,
    )
    h = jnp.maximum(h + b1_ref[...], 0.0)
    # Output layer: (TB, H) @ (H, A) + (1, A)  — logical width, no lane padding.
    out = jnp.dot(
        h, w2_ref[...],
        preferred_element_type=jnp.float32,
        precision=jax.lax.Precision.HIGHEST,
    )
    out_ref[...] = (out + b2_ref[...]).astype(out_ref.dtype)


def pgn_forward(x, w1, b1, w2, b2, *, block_b=2048):
    """Fused MLP forward. x: (B, input_size) f32 -> (B, n_actions) f32 logits."""
    B, D = x.shape
    H = w1.shape[1]
    A = w2.shape[1]

    # Identity reshapes if init already produced (1, H) / (1, A) biases.
    b1r = jnp.reshape(b1, (1, H))
    b2r = jnp.reshape(b2, (1, A))

    # Batch tile: multiple of 8 sublanes.  For moderate/large batches cap at
    # ceil(B/2) so grid >= 2 and the "parallel" axis spans both v7x TensorCores.
    if B > 256:
        TB = min(block_b, _round_up(pl.cdiv(B, 2), 8))
    else:
        TB = min(block_b, _round_up(B, 8))
    grid = (pl.cdiv(B, TB),)  # ragged tail handled by Pallas (masked writeback)

    cost = pl.CostEstimate(
        flops=2 * B * (D * H + H * A),
        transcendentals=0,
        bytes_accessed=4 * (B * D + D * H + H + H * A + A + B * A),
    )

    # NOTE: the (TB, D=4) x block lane-pads to 128 lanes in VMEM; at D=4 the
    # absolute bytes are tiny, so we keep the simple layout (see review item 7).
    out = pl.pallas_call(
        pgn_kernel,
        out_shape=jax.ShapeDtypeStruct((B, A), jnp.float32),
        grid=grid,
        in_specs=[
            pl.BlockSpec((TB, D), lambda i: (i, 0)),   # x: tiled over batch
            pl.BlockSpec((D, H), lambda i: (0, 0)),    # w1: VMEM-resident
            pl.BlockSpec((1, H), lambda i: (0, 0)),    # b1: VMEM-resident
            pl.BlockSpec((H, A), lambda i: (0, 0)),    # w2: VMEM-resident
            pl.BlockSpec((1, A), lambda i: (0, 0)),    # b2: VMEM-resident
        ],
        out_specs=pl.BlockSpec((TB, A), lambda i: (i, 0)),
        compiler_params=pltpu.CompilerParams(
            dimension_semantics=("parallel",),
        ),
        cost_estimate=cost,
    )(x, w1, b1r, w2, b2r)

    return out


def init_pgn_params(key, input_size, n_actions, hidden=128):
    """Deterministic init mimicking PyTorch nn.Linear default (uniform +-1/sqrt(fan_in)).

    Biases are stored pre-shaped (1, H) / (1, A) so the per-call path does no work.
    """
    k1, k2, k3, k4 = jax.random.split(key, 4)
    lim1 = 1.0 / jnp.sqrt(jnp.float32(input_size))
    lim2 = 1.0 / jnp.sqrt(jnp.float32(hidden))
    w1 = jax.random.uniform(k1, (input_size, hidden), jnp.float32, -lim1, lim1)
    b1 = jax.random.uniform(k2, (1, hidden), jnp.float32, -lim1, lim1)
    w2 = jax.random.uniform(k3, (hidden, n_actions), jnp.float32, -lim2, lim2)
    b2 = jax.random.uniform(k4, (1, n_actions), jnp.float32, -lim2, lim2)
    return w1, b1, w2, b2


def _reference(x, w1, b1, w2, b2):
    """Pure-JAX f32 reference (explicit HIGHEST precision, matching the kernel)."""
    h = jnp.maximum(
        jnp.dot(x, w1, precision=jax.lax.Precision.HIGHEST) + b1, 0.0
    )
    return jnp.dot(h, w2, precision=jax.lax.Precision.HIGHEST) + b2


if __name__ == "__main__":
    # CartPole-v0: observation dim = 4, n_actions = 2.
    input_size, n_actions, batch = 4, 2, 8

    key = jax.random.PRNGKey(0)
    kx, kp = jax.random.split(key)
    x = jax.random.normal(kx, (batch, input_size), jnp.float32)
    w1, b1, w2, b2 = init_pgn_params(kp, input_size, n_actions)

    out = jax.block_until_ready(pgn_forward(x, w1, b1, w2, b2))
    ref = _reference(x, w1, b1, w2, b2)
    assert out.shape == (batch, n_actions)
    assert jnp.allclose(out, ref, atol=1e-5), "mismatch vs reference"

    # Larger, non-multiple-of-tile batch to exercise the ragged-tail grid path
    # and the >=2-grid-step (megacore) branch.
    big_b = 1300
    xb = jax.random.normal(kx, (big_b, input_size), jnp.float32)
    out_b = jax.block_until_ready(pgn_forward(xb, w1, b1, w2, b2))
    ref_b = _reference(xb, w1, b1, w2, b2)
    assert out_b.shape == (big_b, n_actions)
    assert jnp.allclose(out_b, ref_b, atol=1e-5), "mismatch vs reference (large batch)"

    print("KERNEL_OK")
</pallas_src>

<mosaic_0001>
module attributes {stable_mosaic.version = 11 : i64} {
  func.func @pgn_kernel(%arg0: i32, %arg1: memref<8x4xf32, #tpu.memory_space<vmem>>, %arg2: memref<4x128xf32, #tpu.memory_space<vmem>>, %arg3: memref<1x128xf32, #tpu.memory_space<vmem>>, %arg4: memref<128x2xf32, #tpu.memory_space<vmem>>, %arg5: memref<1x2xf32, #tpu.memory_space<vmem>>, %arg6: memref<8x2xf32, #tpu.memory_space<vmem>>) attributes {dimension_semantics = [#tpu.dimension_semantics<parallel>], iteration_bounds = array<i64: 1>, scalar_prefetch = 0 : i64, scratch_operands = 0 : i64, tpu.core_type = #tpu.core_type<tc>, window_params = [{transform_indices = @transform_0, window_bounds = array<i64: 8, 4>}, {pipeline_mode = #tpu.pipeline_mode<synchronous>, transform_indices = @transform_1, window_bounds = array<i64: 4, 128>}, {pipeline_mode = #tpu.pipeline_mode<synchronous>, transform_indices = @transform_2, window_bounds = array<i64: 1, 128>}, {pipeline_mode = #tpu.pipeline_mode<synchronous>, transform_indices = @transform_3, window_bounds = array<i64: 128, 2>}, {pipeline_mode = #tpu.pipeline_mode<synchronous>, transform_indices = @transform_4, window_bounds = array<i64: 1, 2>}, {transform_indices = @transform_5, window_bounds = array<i64: 8, 2>}]} {
    %c0 = arith.constant 0 : index
    %c0_0 = arith.constant 0 : index
    %0 = vector.load %arg1[%c0, %c0_0] : memref<8x4xf32, #tpu.memory_space<vmem>>, vector<8x4xf32>
    %c0_1 = arith.constant 0 : index
    %c0_2 = arith.constant 0 : index
    %1 = vector.load %arg2[%c0_1, %c0_2] : memref<4x128xf32, #tpu.memory_space<vmem>>, vector<4x128xf32>
    %cst = arith.constant dense<0.000000e+00> : vector<8x128xf32>
    %2 = tpu.matmul %0, %1, %cst {dimension_numbers = #tpu.dot_dimension_numbers<[1], [0], [0], [1], [0, 0, 1, 1], [], []>, precision = #tpu.contract_precision<fp32>} : vector<8x4xf32>, vector<4x128xf32>, vector<8x128xf32> -> vector<8x128xf32>
    %c0_3 = arith.constant 0 : index
    %c0_4 = arith.constant 0 : index
    %3 = vector.load %arg3[%c0_3, %c0_4] : memref<1x128xf32, #tpu.memory_space<vmem>>, vector<1x128xf32>
    %4 = vector.broadcast %3 : vector<1x128xf32> to vector<8x128xf32>
    %5 = arith.addf %2, %4 : vector<8x128xf32>
    %cst_5 = arith.constant 0.000000e+00 : f32
    %6 = vector.broadcast %cst_5 : f32 to vector<8x128xf32>
    %7 = arith.maximumf %5, %6 : vector<8x128xf32>
    %c0_6 = arith.constant 0 : index
    %c0_7 = arith.constant 0 : index
    %8 = vector.load %arg4[%c0_6, %c0_7] : memref<128x2xf32, #tpu.memory_space<vmem>>, vector<128x2xf32>
    %cst_8 = arith.constant dense<0.000000e+00> : vector<8x2xf32>
    %9 = tpu.matmul %7, %8, %cst_8 {dimension_numbers = #tpu.dot_dimension_numbers<[1], [0], [0], [1], [0, 0, 1, 1], [], []>, precision = #tpu.contract_precision<fp32>} : vector<8x128xf32>, vector<128x2xf32>, vector<8x2xf32> -> vector<8x2xf32>
    %c0_9 = arith.constant 0 : index
    %c0_10 = arith.constant 0 : index
    %10 = vector.load %arg5[%c0_9, %c0_10] : memref<1x2xf32, #tpu.memory_space<vmem>>, vector<1x2xf32>
    %11 = vector.broadcast %10 : vector<1x2xf32> to vector<8x2xf32>
    %12 = arith.addf %9, %11 : vector<8x2xf32>
    %c0_11 = arith.constant 0 : index
    %c0_12 = arith.constant 0 : index
    %13 = vector.load %arg6[%c0_11, %c0_12] : memref<8x2xf32, #tpu.memory_space<vmem>>, vector<8x2xf32>
    tpu.vector_store %arg6[%c0_11, %c0_12], %12 {strides = array<i32>} : memref<8x2xf32, #tpu.memory_space<vmem>>, vector<8x2xf32>,
    return
  }
  func.func @transform_0(%arg0: i32) -> (i32, i32) {
    %c0_i32 = arith.constant 0 : i32
    %c0_i32_0 = arith.constant 0 : i32
    return %arg0, %c0_i32 : i32, i32
  }
  func.func @transform_1(%arg0: i32) -> (i32, i32) {
    %c0_i32 = arith.constant 0 : i32
    %c0_i32_0 = arith.constant 0 : i32
    %c0_i32_1 = arith.constant 0 : i32
    return %c0_i32, %c0_i32_0 : i32, i32
  }
  func.func @transform_2(%arg0: i32) -> (i32, i32) {
    %c0_i32 = arith.constant 0 : i32
    %c0_i32_0 = arith.constant 0 : i32
    %c0_i32_1 = arith.constant 0 : i32
    return %c0_i32, %c0_i32_0 : i32, i32
  }
  func.func @transform_3(%arg0: i32) -> (i32, i32) {
    %c0_i32 = arith.constant 0 : i32
    %c0_i32_0 = arith.constant 0 : i32
    %c0_i32_1 = arith.constant 0 : i32
    return %c0_i32, %c0_i32_0 : i32, i32
  }
  func.func @transform_4(%arg0: i32) -> (i32, i32) {
    %c0_i32 = arith.constant 0 : i32
    %c0_i32_0 = arith.constant 0 : i32
    %c0_i32_1 = arith.constant 0 : i32
    return %c0_i32, %c0_i32_0 : i32, i32
  }
  func.func @transform_5(%arg0: i32) -> (i32, i32) {
    %c0_i32 = arith.constant 0 : i32
    %c0_i32_0 = arith.constant 0 : i32
    return %arg0, %c0_i32 : i32, i32
  }
}

</mosaic_0001>

<bundles_post_ra>
// kernel: tpu_custom_call.1
= control target key start
LH: loop header
LB: loop body
LE: loop exit
PB: predicated region body
PF: predicated region fallthrough
CT: control target
= control target key end

     0   :  { %vm33_vm0 = vcmask 1043456   ;;  %vm29_vm1 = vcmask 31744   ;;  %v1512_v0 = vmov 0.0   ;;  %vm1513_vm2 = vmmov 0   ;;  %s1990_s1 = inlined_call_operand.vmem [shape: f32[4,128], index: 1, kind: input, shape index: {}]   ;;  %s1991_s0 = inlined_call_operand.vmem [shape: f32[8,4], index: 0, kind: input, shape index: {}]   ;;  %s1992_s3 = inlined_call_operand.vmem [shape: f32[128,2], index: 3, kind: input, shape index: {}]   ;;  %s1993_s2 = inlined_call_operand.vmem [shape: f32[1,128], index: 2, kind: input, shape index: {}]   ;;  %s1994_s4 = inlined_call_operand.vmem [shape: f32[1,2], index: 4, kind: input, shape index: {}]   ;;  %s1995_s5 = inlined_call_operand.vmem [shape: f32[8,2], index: 5, kind: output, shape index: {}]  }
   0x1   :  { %1270 = vmatprep.subr.mxu0 %v1512_v0  ;;  %v21_v1 = vld [vmem:[%s1990_s1] sm:$0xf]  ;;  %1272 = vmatprep.mubr.msk.f32.mxu0 %vm1513_vm2, %v1512_v0  ;;  %v499_v3 = vld [vmem:[%s1992_s3 + $0x78] sm:$0xff]  ;;  %v498_v6 = vld [vmem:[%s1992_s3 + $0x70] sm:$0xff]  ;;  %vm1148_vm3 = vcmask 15360  }
   0x2   :  { %v20_v2 = vld [vmem:[%s1991_s0] sm:$0xff]  ;;  %v35_v4 = vsel %vm33_vm0, %v21_v1, 0  ;;  %1275 = vmatprep.subr.mxu1 %v1512_v0  ;;  %1277 = vmatprep.mubr.msk.f32.mxu1 %vm1513_vm2, %v1512_v0  ;;  %v1564_v9 = vand.u32 4294901760, %v499_v3  ;;  %v497_v10 = vld [vmem:[%s1992_s3 + $0x68] sm:$0xff]  ;;  %v1570_v13 = vand.u32 4294901760, %v498_v6  ;;  %v495_v19 = vld [vmem:[%s1992_s3 + $0x58] sm:$0xff] }
   0x3   :  { %v31_v5 = vsel %vm29_vm1, %v20_v2, 0  ;;  %v68_v7 = vand.u32 4294901760, %v35_v4  ;;  %v496_v14 = vld [vmem:[%s1992_s3 + $0x60] sm:$0xff]  ;;  %v1579_v18 = vand.u32 4294901760, %v497_v10  ;;  %v1589_v24 = vand.u32 4294901760, %v495_v19  ;;  %v494_v25 = vld [vmem:[%s1992_s3 + $0x50] sm:$0xff] }
   0x4   :  { %v1562_v8 = vand.u32 4294901760, %v31_v5  ;;  %v1577_v17 = vsub.f32 %v499_v3, %v1564_v9  ;;  %v1585_v22 = vsub.f32 %v498_v6, %v1570_v13  ;;  %v1587_v23 = vand.u32 4294901760, %v496_v14  ;;  %v493_v30 = vld [vmem:[%s1992_s3 + $0x48] sm:$0xff]  ;;  %v492_v34 = vld [vmem:[%s1992_s3 + $0x40] sm:$0xff]  ;;  %v491_v63 = vld [vmem:[%s1992_s3 + $0x38] sm:$0xff] }
   0x5   :  { %1271 = vmatpush3.msra.mxu0 %v68_v7  ;;  %v145_v12 = vsub.f32 %v35_v4, %v68_v7  ;;  %v1596_v29 = vsub.f32 %v497_v10, %v1579_v18  ;;  %v1605_v33 = vand.u32 4294901760, %v494_v25  ;;  %v1619_v37 = vsub.f32 %v495_v19, %v1589_v24  ;;  %v490_v2 = vld [vmem:[%s1992_s3 + $0x30] sm:$0xff]  ;;  %v488_v10 = vld [vmem:[%s1992_s3 + $0x20] sm:$0xff] }
   0x6   :  { %v104_v11 = vsub.f32 %v31_v5, %v1562_v8  ;;  %1280 = vmatprep.subr.mxu0 %v1512_v0  ;;  %v601_v28 = vand.u32 4294901760, %v1577_v17  ;;  %v608_v31 = vand.u32 4294901760, %v1585_v22  ;;  %v1603_v32 = vsub.f32 %v496_v14, %v1587_v23  ;;  %v489_v5 = vld [vmem:[%s1992_s3 + $0x28] sm:$0xff] }
   0x7   :  { %v146_v16 = vand.u32 4294901760, %v145_v12  ;;  %v615_v36 = vand.u32 4294901760, %v1596_v29  ;;  %v1621_v38 = vand.u32 4294901760, %v493_v30  ;;  %v1631_v41 = vsub.f32 %v494_v25, %v1605_v33 }
   0x8   :  { %v105_v15 = vand.u32 4294901760, %v104_v11  ;;  %v602_v35 = vsub.f32 %v1577_v17, %v601_v28  ;;  %v609_v39 = vsub.f32 %v1585_v22, %v608_v31  ;;  %v622_v40 = vand.u32 4294901760, %v1603_v32 }
   0x9   :  { %v147_v21 = vsub.f32 %v145_v12, %v146_v16  ;;  %v1633_v42 = vand.u32 4294901760, %v492_v34  ;;  %v616_v44 = vsub.f32 %v1596_v29, %v615_v36  ;;  %v629_v45 = vand.u32 4294901760, %v1619_v37 }
   0xa   :  { %v106_v20 = vsub.f32 %v104_v11, %v105_v15  ;;  %v603_v43 = vand.u32 4294901760, %v602_v35  ;;  %v1643_v46 = vsub.f32 %v493_v30, %v1621_v38  ;;  %v610_v47 = vand.u32 4294901760, %v609_v39 }
   0xb   :  { %v148_v27 = vand.u32 4294901760, %v147_v21  ;;  %v623_v48 = vsub.f32 %v1603_v32, %v622_v40  ;;  %v636_v49 = vand.u32 4294901760, %v1631_v41  ;;  %v1654_v50 = vsub.f32 %v492_v34, %v1633_v42 }
   0xc   :  { %v107_v26 = vand.u32 4294901760, %v106_v20  ;;  %v617_v51 = vand.u32 4294901760, %v616_v44  ;;  %v630_v52 = vsub.f32 %v1619_v37, %v629_v45  ;;  %v643_v53 = vand.u32 4294901760, %v1643_v46  ;;  %v485_v44 = vld [vmem:[%s1992_s3 + $0x8] sm:$0xff] }
   0xd   :  { %1276 = vmatpush3.msra.mxu1 %v148_v27  ;;  %v624_v54 = vand.u32 4294901760, %v623_v48  ;;  %v637_v55 = vsub.f32 %v1631_v41, %v636_v49  ;;  %v650_v56 = vand.u32 4294901760, %v1654_v50  ;;  %v1703_v1 = vand.u32 4294901760, %v491_v63  ;;  %v486_v27 = vld [vmem:[%s1992_s3 + $0x10] sm:$0xff] }
   0xe   :  { %1273 = vmatmul.mubr.f32.vlgmr.msra.gmra.mxu0 %v107_v26  ;;  %1278 = vmatmul.mubr.f32.vlgmr.msra.gmra.mxu1 %v1562_v8  ;;  %v631_v57 = vand.u32 4294901760, %v630_v52  ;;  %v644_v58 = vsub.f32 %v1643_v46, %v643_v53  ;;  %v1711_v4 = vand.u32 4294901760, %v490_v2  ;;  %v1761_v39 = vand.u32 4294901760, %v486_v27 }
   0xf   :  { %1281 = vmatpush3.msra.mxu0 %v145_v12  ;;  %1285 = vmatprep.subr.mxu1 %v1512_v0  ;;  %v638_v59 = vand.u32 4294901760, %v637_v55  ;;  %v651_v60 = vsub.f32 %v1654_v50, %v650_v56  ;;  %v1709_v3 = vsub.f32 %v491_v63, %v1703_v1  ;;  %v1777_v52 = vand.u32 4294901760, %v485_v44  ;;  %v484_v55 = vld [vmem:[%s1992_s3] sm:$0xff] }
  0x10   :  { %1282 = vmatprep.mubr.msk.f32.mxu0 %vm1513_vm2, %v1512_v0  ;;  %1286 = vmatpush3.msra.mxu1 %v68_v7  ;;  %v645_v61 = vand.u32 4294901760, %v644_v58 }
  0x11   :  { %1290 = vmatprep.subr.mxu0 %v1512_v0  ;;  %1287 = vmatprep.mubr.msk.f32.mxu1 %vm1513_vm2, %v1512_v0  ;;  %v652_v62 = vand.u32 4294901760, %v651_v60  ;;  %v657_v6 = vand.u32 4294901760, %v1709_v3  ;;  %v1790_v60 = vand.u32 4294901760, %v484_v55 }
  0x12   :  { %1283 = vmatmul.mubr.f32.vlgmr.msra.gmra.mxu0 %v104_v11  ;;  %1288 = vmatmul.mubr.f32.vlgmr.msra.gmra.mxu1 %v105_v15  ;;  %v1736_v15 = vand.u32 4294901760, %v488_v10 }
  0x13   :  { %1291 = vmatpush3.msra.mxu0 %v146_v16  ;;  %1295 = vmatprep.subr.mxu1 %v1512_v0  ;;  %v658_v11 = vsub.f32 %v1709_v3, %v657_v6  ;;  %v487_v16 = vld [vmem:[%s1992_s3 + $0x18] sm:$0xff] }
  0x14   :  { %1292 = vmatprep.mubr.msk.f32.mxu0 %vm1513_vm2, %v1512_v0  ;;  %1296 = vmatpush3.msra.mxu1 %v68_v7  ;;  %v1720_v7 = vsub.f32 %v490_v2, %v1711_v4  ;;  %v1748_v25 = vsub.f32 %v488_v10, %v1736_v15  ;;  %v1751_v26 = vand.u32 4294901760, %v487_v16  ;;  %v1803_v2 = vsub.f32 %v484_v55, %v1790_v60 }
  0x15   :  { %1297 = vmatprep.mubr.msk.f32.mxu1 %vm1513_vm2, %v1512_v0  ;;  %1335 = vmatprep.subr.mxu1 %v1512_v0  ;;  %v659_v19 = vand.u32 4294901760, %v658_v11 }
  0x16   :  { %1293 = vmatmul.mubr.f32.vlgmr.msra.gmra.mxu0 %v1562_v8  ;;  %1298 = vmatmul.mubr.f32.vlgmr.msra.gmra.mxu1 %v1562_v8  ;;  %v1722_v8 = vand.u32 4294901760, %v489_v5  ;;  %v664_v12 = vand.u32 4294901760, %v1720_v7  ;;  %v2000_v35 = vand.u32 4294901760, %v1748_v25 }
  0x17   :  { %1300 = vmatprep.subr.mxu0 %v1512_v0  ;;  %1336 = vmatpush3.msra.mxu1 %v603_v43  ;;  %v1765_v43 = vsub.f32 %v487_v16, %v1751_v26  ;;  %v1996_v16 = vand.u32 4294901760, %v1803_v2 }
  0x18   :  { %1301 = vmatpush3.msra.mxu0 %v1564_v9  ;;  %1337 = vmatprep.subr.mxu1 %v1512_v0  ;;  %v1734_v14 = vsub.f32 %v489_v5, %v1722_v8  ;;  %v665_v20 = vsub.f32 %v1720_v7, %v664_v12  ;;  %v679_v48 = vsub.f32 %v1748_v25, %v2000_v35 }
  0x19   :  { %1302 = vmatprep.subr.mxu0 %v1512_v0  ;;  %1338 = vmatpush3.msra.mxu1 %v610_v47 }
  0x1a   :  { %1303 = vmatpush3.msra.mxu0 %v1570_v13  ;;  %1339 = vmatprep.subr.mxu1 %v1512_v0  ;;  %v2001_v21 = vand.u32 4294901760, %v1734_v14  ;;  %v666_v30 = vand.u32 4294901760, %v665_v20  ;;  %v707_v20 = vsub.f32 %v1803_v2, %v1996_v16 }
  0x1b   :  { %1304 = vmatprep.subr.mxu0 %v1512_v0  ;;  %1340 = vmatpush3.msra.mxu1 %v617_v51  ;;  %v1775_v51 = vsub.f32 %v486_v27, %v1761_v39 }
  0x1c   :  { %1305 = vmatpush3.msra.mxu0 %v1579_v18  ;;  %1341 = vmatprep.subr.mxu1 %v1512_v0  ;;  %v672_v34 = vsub.f32 %v1734_v14, %v2001_v21  ;;  %v708_v27 = vand.u32 4294901760, %v707_v20 }
  0x1d   :  { %1306 = vmatprep.subr.mxu0 %v1512_v0  ;;  %1342 = vmatpush3.msra.mxu1 %v624_v54  ;;  %v1999_v54 = vand.u32 4294901760, %v1765_v43  ;;  %v1998_v58 = vand.u32 4294901760, %v1775_v51 }
  0x1e   :  { %1307 = vmatpush3.msra.mxu0 %v1587_v23  ;;  %1343 = vmatprep.subr.mxu1 %v1512_v0  ;;  %v673_v47 = vand.u32 4294901760, %v672_v34 }
  0x1f   :  { %1308 = vmatprep.subr.mxu0 %v1512_v0  ;;  %1344 = vmatpush3.msra.mxu1 %v631_v57  ;;  %v680_v57 = vand.u32 4294901760, %v679_v48 }
  0x20   :  { %1309 = vmatpush3.msra.mxu0 %v1589_v24  ;;  %1345 = vmatprep.subr.mxu1 %v1512_v0 }
  0x21   :  { %1310 = vmatprep.subr.mxu0 %v1512_v0  ;;  %1346 = vmatpush3.msra.mxu1 %v638_v59  ;;  %v1788_v59 = vsub.f32 %v485_v44, %v1777_v52 }
  0x22   :  { %1311 = vmatpush3.msra.mxu0 %v1605_v33  ;;  %1347 = vmatprep.subr.mxu1 %v1512_v0 }
  0x23   :  { %1312 = vmatprep.subr.mxu0 %v1512_v0  ;;  %1348 = vmatpush3.msra.mxu1 %v645_v61  ;;  %v686_v61 = vsub.f32 %v1765_v43, %v1999_v54  ;;  %v1997_v63 = vand.u32 4294901760, %v1788_v59 }
  0x24   :  { %1313 = vmatpush3.msra.mxu0 %v1621_v38  ;;  %1349 = vmatprep.subr.mxu1 %v1512_v0 }
  0x25   :  { %1314 = vmatprep.subr.mxu0 %v1512_v0  ;;  %1350 = vmatpush3.msra.mxu1 %v652_v62  ;;  %v693_v62 = vsub.f32 %v1775_v51, %v1998_v58  ;;  %v687_v5 = vand.u32 4294901760, %v686_v61  ;;  %v700_v11 = vsub.f32 %v1788_v59, %v1997_v63 }
  0x26   :  { %1315 = vmatpush3.msra.mxu0 %v1633_v42  ;;  %1351 = vmatprep.subr.mxu1 %v1512_v0 }
  0x27   :  { %1316 = vmatprep.subr.mxu0 %v1512_v0  ;;  %1367 = vmatprep.mubr.msk.f32.mxu1 %vm1513_vm2, %v1512_v0  ;;  %v694_v10 = vand.u32 4294901760, %v693_v62 }
  0x28   :  { %1332 = vmatprep.mubr.msk.f32.mxu0 %vm1513_vm2, %v1512_v0  ;;  %1317 = vmatpush3.msra.mxu0 %v1703_v1 }
  0x29   :  { %1318 = vmatprep.subr.mxu0 %v1512_v0  ;;  %1352 = vmatpush3.msra.mxu1 %v659_v19  ;;  %v701_v19 = vand.u32 4294901760, %v700_v11 }
  0x2a   :  { %1319 = vmatpush3.msra.mxu0 %v1711_v4  ;;  %1353 = vmatprep.subr.mxu1 %v1512_v0 }
  0x2b   :  { %1320 = vmatprep.subr.mxu0 %v1512_v0  ;;  %1354 = vmatpush3.msra.mxu1 %v666_v30  ;;  %v1154_v30 = vld [vmem:[%s1993_s2] ss:$0 sm:$0xff] }
  0x2c   :  { %1321 = vmatpush3.msra.mxu0 %v1722_v8  ;;  %1355 = vmatprep.subr.mxu1 %v1512_v0 }
  0x2d   :  { %1322 = vmatprep.subr.mxu0 %v1512_v0  ;;  %1356 = vmatpush3.msra.mxu1 %v673_v47 }
  0x2e   :  { %1323 = vmatpush3.msra.mxu0 %v1736_v15  ;;  %1357 = vmatprep.subr.mxu1 %v1512_v0 }
  0x2f   :  { %1324 = vmatprep.subr.mxu0 %v1512_v0  ;;  %1358 = vmatpush3.msra.mxu1 %v680_v57 }
  0x30   :  { %1325 = vmatpush3.msra.mxu0 %v1751_v26  ;;  %1359 = vmatprep.subr.mxu1 %v1512_v0 }
  0x31   :  { %1326 = vmatprep.subr.mxu0 %v1512_v0  ;;  %1360 = vmatpush3.msra.mxu1 %v687_v5 }
  0x32   :  { %1327 = vmatpush3.msra.mxu0 %v1761_v39  ;;  %1361 = vmatprep.subr.mxu1 %v1512_v0 }
  0x33   :  { %1328 = vmatprep.subr.mxu0 %v1512_v0  ;;  %1362 = vmatpush3.msra.mxu1 %v694_v10 }
  0x34   :  { %1329 = vmatpush3.msra.mxu0 %v1777_v52  ;;  %1363 = vmatprep.subr.mxu1 %v1512_v0 }
  0x35   :  { %1330 = vmatprep.subr.mxu0 %v1512_v0  ;;  %1364 = vmatpush3.msra.mxu1 %v701_v19 }
  0x36   :  { %1331 = vmatpush3.msra.mxu0 %v1790_v60  ;;  %1365 = vmatprep.subr.mxu1 %v1512_v0 }
  0x37   :  { %1370 = vmatprep.subr.mxu0 %v1512_v0  ;;  %1366 = vmatpush3.msra.mxu1 %v708_v27 }
  0x38   :  { %1405 = vmatprep.subr.mxu1 %v1512_v0 }
  0xce   :  { %v109_v34 = vpop.f32.mrf.mxu0  ;;  %v185_v47 = vpop.f32.mrf.mxu1 }
  0xcf   :  { %v110_v44 = vadd.f32 %v1154_v30, %v109_v34 }
  0xd0   :  { %v1274_v48 = vpop.f32.mrf.mxu0  ;;  %v1279_v57 = vpop.f32.mrf.mxu1 }
  0xd1   :  { %v186_v55 = vadd.f32 %v185_v47, %v110_v44 }
  0xd2   :  { %v259_v61 = vpop.f32.mrf.mxu0  ;;  %v333_v5 = vpop.f32.mrf.mxu1 }
  0xd3   :  { %v260_v62 = vadd.f32 %v259_v61, %v186_v55 }
  0xd4   :  { %v1284_v10 = vpop.f32.mrf.mxu0  ;;  %v1289_v19 = vpop.f32.mrf.mxu1 }
  0xd5   :  { %v334_v11 = vadd.f32 %v333_v5, %v260_v62 }
  0xd6   :  { %v407_v20 = vpop.f32.mrf.mxu0  ;;  %v479_v16 = vpop.f32.mrf.mxu1 }
  0xd7   :  { %v408_v27 = vadd.f32 %v407_v20, %v334_v11 }
  0xd8   :  { %v1294_v63 = vpop.f32.mrf.mxu0  ;;  %v1299_v54 = vpop.f32.mrf.mxu1 }
  0xd9   :  { %v480_v58 = vadd.f32 %v479_v16, %v408_v27 }
  0xdb   :  { %v483_v35 = vmax.f32 %v480_v58, 0.0 }
  0xdd   :  { %v1823_v21 = vand.u32 4294901760, %v483_v35 }
  0xdf   :  { %v1826_v30 = vsub.f32 %v483_v35, %v1823_v21  ;;  %1368 = vmatmul.mubr.f32.vlgmr.msra.gmra.mxu1 %v1823_v21 }
  0xe0   :  { %1406 = vmatpush3.msra.mxu1 %v1564_v9  ;;  %1437 = vmatprep.mubr.msk.f32.mxu1 %vm1513_vm2, %v1512_v0 }
  0xe1   :  { %v590_v34 = vand.u32 4294901760, %v1826_v30  ;;  %1407 = vmatprep.subr.mxu1 %v1512_v0 }
  0xe2   :  { %1408 = vmatpush3.msra.mxu1 %v1570_v13 }
  0xe3   :  { %v591_v54 = vsub.f32 %v1826_v30, %v590_v34  ;;  %1409 = vmatprep.subr.mxu1 %v1512_v0 }
  0xe4   :  { %1410 = vmatpush3.msra.mxu1 %v1579_v18 }
  0xe5   :  { %1411 = vmatprep.subr.mxu1 %v1512_v0  ;;  %v592_v35 = vand.u32 4294901760, %v591_v54 }
  0xe6   :  { %1412 = vmatpush3.msra.mxu1 %v1587_v23 }
  0xe7   :  { %1413 = vmatprep.subr.mxu1 %v1512_v0  ;;  %1333 = vmatmul.mubr.f32.vlgmr.msra.gmra.mxu0 %v592_v35 }
  0xe8   :  { %1371 = vmatpush3.msra.mxu0 %v1577_v17  ;;  %1414 = vmatpush3.msra.mxu1 %v1589_v24  ;;  %v2004_v17 = vand.u32 4294901760, %v1765_v43 }
  0xe9   :  { %1372 = vmatprep.subr.mxu0 %v1512_v0  ;;  %1415 = vmatprep.subr.mxu1 %v1512_v0 }
  0xea   :  { %1373 = vmatpush3.msra.mxu0 %v1585_v22  ;;  %1416 = vmatpush3.msra.mxu1 %v1605_v33  ;;  %v2006_v22 = vand.u32 4294901760, %v1788_v59 }
  0xeb   :  { %1374 = vmatprep.subr.mxu0 %v1512_v0  ;;  %1417 = vmatprep.subr.mxu1 %v1512_v0 }
  0xec   :  { %1375 = vmatpush3.msra.mxu0 %v1596_v29  ;;  %1418 = vmatpush3.msra.mxu1 %v1621_v38 }
  0xed   :  { %1376 = vmatprep.subr.mxu0 %v1512_v0  ;;  %1419 = vmatprep.subr.mxu1 %v1512_v0 }
  0xee   :  { %1377 = vmatpush3.msra.mxu0 %v1603_v32  ;;  %1420 = vmatpush3.msra.mxu1 %v1633_v42 }
  0xef   :  { %1378 = vmatprep.subr.mxu0 %v1512_v0  ;;  %1421 = vmatprep.subr.mxu1 %v1512_v0 }
  0xf0   :  { %1379 = vmatpush3.msra.mxu0 %v1619_v37  ;;  %1422 = vmatpush3.msra.mxu1 %v1703_v1 }
  0xf1   :  { %1380 = vmatprep.subr.mxu0 %v1512_v0  ;;  %1423 = vmatprep.subr.mxu1 %v1512_v0 }
  0xf2   :  { %1381 = vmatpush3.msra.mxu0 %v1631_v41  ;;  %1424 = vmatpush3.msra.mxu1 %v1711_v4 }
  0xf3   :  { %1382 = vmatprep.subr.mxu0 %v1512_v0  ;;  %1425 = vmatprep.subr.mxu1 %v1512_v0 }
  0xf4   :  { %1383 = vmatpush3.msra.mxu0 %v1643_v46  ;;  %1426 = vmatpush3.msra.mxu1 %v1722_v8 }
  0xf5   :  { %1384 = vmatprep.subr.mxu0 %v1512_v0  ;;  %1427 = vmatprep.subr.mxu1 %v1512_v0 }
  0xf6   :  { %1385 = vmatpush3.msra.mxu0 %v1654_v50  ;;  %1428 = vmatpush3.msra.mxu1 %v1736_v15 }
  0xf7   :  { %1386 = vmatprep.subr.mxu0 %v1512_v0  ;;  %1429 = vmatprep.subr.mxu1 %v1512_v0 }
  0xf8   :  { %1387 = vmatpush3.msra.mxu0 %v1709_v3  ;;  %1430 = vmatpush3.msra.mxu1 %v1751_v26 }
  0xf9   :  { %1388 = vmatprep.subr.mxu0 %v1512_v0  ;;  %1431 = vmatprep.subr.mxu1 %v1512_v0 }
  0xfa   :  { %1389 = vmatpush3.msra.mxu0 %v1720_v7  ;;  %1432 = vmatpush3.msra.mxu1 %v1761_v39 }
  0xfb   :  { %1390 = vmatprep.subr.mxu0 %v1512_v0  ;;  %1433 = vmatprep.subr.mxu1 %v1512_v0 }
  0xfc   :  { %1391 = vmatpush3.msra.mxu0 %v1734_v14  ;;  %1434 = vmatpush3.msra.mxu1 %v1777_v52 }
  0xfd   :  { %1392 = vmatprep.subr.mxu0 %v1512_v0  ;;  %1435 = vmatprep.subr.mxu1 %v1512_v0 }
  0xfe   :  { %1393 = vmatpush3.msra.mxu0 %v1748_v25  ;;  %1436 = vmatpush3.msra.mxu1 %v1790_v60 }
  0xff   :  { %1394 = vmatprep.subr.mxu0 %v1512_v0  ;;  %1438 = vmatmul.mubr.f32.vlgmr.msra.gmra.mxu1 %v590_v34 }
 0x100   :  { %1475 = vmatprep.subr.mxu1 %v1512_v0  ;;  %1395 = vmatpush3.msra.mxu0 %v1765_v43 }
 0x101   :  { %1476 = vmatpush3.msra.mxu1 %v1564_v9  ;;  %1396 = vmatprep.subr.mxu0 %v1512_v0  ;;  %v2002_v9 = vand.u32 4294901760, %v1734_v14 }
 0x102   :  { %1477 = vmatprep.subr.mxu1 %v1512_v0  ;;  %1397 = vmatpush3.msra.mxu0 %v1775_v51 }
 0x103   :  { %1478 = vmatpush3.msra.mxu1 %v1570_v13  ;;  %1398 = vmatprep.subr.mxu0 %v1512_v0  ;;  %v2003_v13 = vand.u32 4294901760, %v1748_v25 }
 0x104   :  { %1479 = vmatprep.subr.mxu1 %v1512_v0  ;;  %1399 = vmatpush3.msra.mxu0 %v1788_v59 }
 0x105   :  { %1480 = vmatpush3.msra.mxu1 %v1579_v18  ;;  %1400 = vmatprep.subr.mxu0 %v1512_v0  ;;  %v2005_v18 = vand.u32 4294901760, %v1775_v51 }
 0x106   :  { %1481 = vmatprep.subr.mxu1 %v1512_v0  ;;  %1401 = vmatpush3.msra.mxu0 %v1803_v2 }
 0x107   :  { %1402 = vmatprep.mubr.msk.f32.mxu0 %vm1513_vm2, %v1512_v0  ;;  %1482 = vmatpush3.msra.mxu1 %v1587_v23  ;;  %v2007_v23 = vand.u32 4294901760, %v1803_v2 }
 0x108   :  { %1403 = vmatmul.mubr.f32.vlgmr.msra.gmra.mxu0 %v1826_v30  ;;  %1440 = vmatprep.subr.mxu0 %v1512_v0 }
 0x109   :  { %1483 = vmatprep.subr.mxu1 %v1512_v0  ;;  %1441 = vmatpush3.msra.mxu0 %v601_v28 }
 0x10a   :  { %1484 = vmatpush3.msra.mxu1 %v1589_v24  ;;  %1442 = vmatprep.subr.mxu0 %v1512_v0 }
 0x10b   :  { %1485 = vmatprep.subr.mxu1 %v1512_v0  ;;  %1443 = vmatpush3.msra.mxu0 %v608_v31 }
 0x10c   :  { %1486 = vmatpush3.msra.mxu1 %v1605_v33  ;;  %1444 = vmatprep.subr.mxu0 %v1512_v0 }
 0x10d   :  { %1487 = vmatprep.subr.mxu1 %v1512_v0  ;;  %1445 = vmatpush3.msra.mxu0 %v615_v36 }
 0x10e   :  { %1488 = vmatpush3.msra.mxu1 %v1621_v38  ;;  %1446 = vmatprep.subr.mxu0 %v1512_v0  ;;  %v1155_v38 = vld [vmem:[%s1994_s4] ss:$0 sm:$0xff] }
 0x10f   :  { %1489 = vmatprep.subr.mxu1 %v1512_v0  ;;  %1447 = vmatpush3.msra.mxu0 %v622_v40 }
 0x110   :  { %1490 = vmatpush3.msra.mxu1 %v1633_v42  ;;  %1448 = vmatprep.subr.mxu0 %v1512_v0 }
 0x111   :  { %1491 = vmatprep.subr.mxu1 %v1512_v0  ;;  %1449 = vmatpush3.msra.mxu0 %v629_v45 }
 0x112   :  { %1492 = vmatpush3.msra.mxu1 %v1703_v1  ;;  %1450 = vmatprep.subr.mxu0 %v1512_v0 }
 0x113   :  { %1493 = vmatprep.subr.mxu1 %v1512_v0  ;;  %1451 = vmatpush3.msra.mxu0 %v636_v49 }
 0x114   :  { %1494 = vmatpush3.msra.mxu1 %v1711_v4  ;;  %1452 = vmatprep.subr.mxu0 %v1512_v0 }
 0x115   :  { %1495 = vmatprep.subr.mxu1 %v1512_v0  ;;  %1453 = vmatpush3.msra.mxu0 %v643_v53 }
 0x116   :  { %1496 = vmatpush3.msra.mxu1 %v1722_v8  ;;  %1454 = vmatprep.subr.mxu0 %v1512_v0 }
 0x117   :  { %1497 = vmatprep.subr.mxu1 %v1512_v0  ;;  %1455 = vmatpush3.msra.mxu0 %v650_v56 }
 0x118   :  { %1498 = vmatpush3.msra.mxu1 %v1736_v15  ;;  %1456 = vmatprep.subr.mxu0 %v1512_v0 }
 0x119   :  { %1499 = vmatprep.subr.mxu1 %v1512_v0  ;;  %1457 = vmatpush3.msra.mxu0 %v657_v6 }
 0x11a   :  { %1500 = vmatpush3.msra.mxu1 %v1751_v26  ;;  %1458 = vmatprep.subr.mxu0 %v1512_v0 }
 0x11b   :  { %1501 = vmatprep.subr.mxu1 %v1512_v0  ;;  %1459 = vmatpush3.msra.mxu0 %v664_v12 }
 0x11c   :  { %1502 = vmatpush3.msra.mxu1 %v1761_v39  ;;  %1460 = vmatprep.subr.mxu0 %v1512_v0 }
 0x11d   :  { %1503 = vmatprep.subr.mxu1 %v1512_v0  ;;  %1461 = vmatpush3.msra.mxu0 %v2002_v9 }
 0x11e   :  { %1504 = vmatpush3.msra.mxu1 %v1777_v52  ;;  %1462 = vmatprep.subr.mxu0 %v1512_v0 }
 0x11f   :  { %1505 = vmatprep.subr.mxu1 %v1512_v0  ;;  %1463 = vmatpush3.msra.mxu0 %v2003_v13 }
 0x120   :  { %1506 = vmatpush3.msra.mxu1 %v1790_v60  ;;  %1507 = vmatprep.mubr.msk.f32.mxu1 %vm1513_vm2, %v1512_v0 }
 0x121   :  { %1464 = vmatprep.subr.mxu0 %v1512_v0  ;;  %1508 = vmatmul.mubr.f32.vlgmr.msra.gmra.mxu1 %v1823_v21 }
 0x122   :  { %1465 = vmatpush3.msra.mxu0 %v2004_v17  ;;  %1472 = vmatprep.mubr.msk.f32.mxu0 %vm1513_vm2, %v1512_v0 }
 0x123   :  { %1466 = vmatprep.subr.mxu0 %v1512_v0 }
 0x124   :  { %1467 = vmatpush3.msra.mxu0 %v2005_v18 }
 0x125   :  { %1468 = vmatprep.subr.mxu0 %v1512_v0 }
 0x126   :  { %1469 = vmatpush3.msra.mxu0 %v2006_v22 }
 0x127   :  { %1470 = vmatprep.subr.mxu0 %v1512_v0 }
 0x128   :  { %1471 = vmatpush3.msra.mxu0 %v2007_v23 }
 0x129   :  { %1473 = vmatmul.mubr.f32.vlgmr.msra.gmra.mxu0 %v1823_v21 }
 0x19f   :  { %v745_v24 = vpop.f32.mrf.mxu1 }
 0x1a1   :  { %v1369_v28 = vpop.f32.mrf.mxu1 }
 0x1a7   :  { %v594_v29 = vpop.f32.mrf.mxu0 }
 0x1a8   :  { %v595_v40 = vadd.f32 %v1155_v38, %v594_v29 }
 0x1a9   :  { %v1334_v31 = vpop.f32.mrf.mxu0 }
 0x1aa   :  { %v746_v0 = vadd.f32 %v745_v24, %v595_v40 }
 0x1bf   :  { %v938_v32 = vpop.f32.mrf.mxu1 }
 0x1c1   :  { %v1439_v33 = vpop.f32.mrf.mxu1 }
 0x1c8   :  { %v849_v36 = vpop.f32.mrf.mxu0 }
 0x1c9   :  { %v850_v45 = vadd.f32 %v849_v36, %v746_v0 }
 0x1ca   :  { %v1404_v37 = vpop.f32.mrf.mxu0 }
 0x1cb   :  { %v939_v46 = vadd.f32 %v938_v32, %v850_v45 }
 0x1e1   :  { %v1144_v41 = vpop.f32.mrf.mxu1 }
 0x1e3   :  { %v1509_v42 = vpop.f32.mrf.mxu1 }
 0x1e9   :  { %v1057_v49 = vpop.f32.mrf.mxu0 }
 0x1ea   :  { %v1058_v50 = vadd.f32 %v1057_v49, %v939_v46 }
 0x1eb   :  { %v1474_v53 = vpop.f32.mrf.mxu0 }
 0x1ec   :  { %v1145_v56 = vadd.f32 %v1144_v41, %v1058_v50 }
 0x1ee   :  { %1149 = vst.msk [vmem:[%s1995_s5] sm:$0xff] %vm1148_vm3, %v1145_v56 }

</bundles_post_ra>
